<compile_context>
chip_gen: v5e
topology: v5e:2x2
jax: 0.10.0
libtpu: 0.0.40
codegen_flags: <defaults>
</compile_context>

<pallas_src>
import functools

import jax
import jax.numpy as jnp
from jax.experimental import pallas as pl
from jax.experimental.pallas import tpu as pltpu

IN_FEATURES = 28 * 28          # 784
HIDDEN = 128
OUT_FEATURES = 10
OUT_PADDED = 128               # lane-dense padded output width


def _round_up(x, m):
    return ((x + m - 1) // m) * m


def mlp_kernel(x_ref, w1_ref, b1_ref, w2_ref, b2_ref, o_ref):
    # In-kernel f32 -> bf16 cast of the activation tile (VPU work hidden
    # under the x-tile DMA); both matmuls accumulate in f32 on the MXU.
    x_bf = x_ref[...].astype(jnp.bfloat16)
    h = jnp.dot(x_bf, w1_ref[...], preferred_element_type=jnp.float32)
    h = jnp.maximum(h + b1_ref[...], 0.0)                 # bias + ReLU in f32
    out = jnp.dot(h.astype(jnp.bfloat16), w2_ref[...],
                  preferred_element_type=jnp.float32)
    o_ref[...] = (out + b2_ref[...]).astype(o_ref.dtype)


def prepare_params(w1, b1, w2, b2):
    """One-time weight preprocessing (hoisted out of the hot forward path).

    w1: (784, 128), b1: (128,), w2: (128, 10), b2: (10,)
    (weights stored transposed relative to PyTorch's (out, in) layout).
    """
    w1_bf = w1.astype(jnp.bfloat16)
    b1_r = b1.reshape(1, HIDDEN).astype(jnp.float32)
    # Zero-pad fc2 to a lane-dense 128-wide output slab (no masked vst).
    w2_p = jnp.zeros((HIDDEN, OUT_PADDED), jnp.bfloat16).at[:, :OUT_FEATURES].set(
        w2.astype(jnp.bfloat16))
    b2_p = jnp.zeros((1, OUT_PADDED), jnp.float32).at[:, :OUT_FEATURES].set(
        b2.astype(jnp.float32))
    return w1_bf, b1_r, w2_p, b2_p


@functools.partial(jax.jit, static_argnames=("tile_b",))
def net_forward(x, w1_bf, b1_r, w2_p, b2_p, *, tile_b=512):
    """x: (B, 1, 28, 28) or (B, 28, 28) float32 (NCHW like PyTorch).

    Returns (B, 10) float32 logits.
    """
    B = x.shape[0]
    x2d = x.reshape(B, -1)                      # x.view(x.size(0), -1) — free
    assert x2d.shape[1] == IN_FEATURES

    # Batch tile: multiple of 8 sublanes, capped at tile_b. No jnp.pad — the
    # ragged final block is masked on write by Pallas.
    tb = _round_up(min(tile_b, _round_up(B, 8)), 8)
    # Give v7x's two TensorCores at least two parallel grid steps when the
    # batch is big enough to split.
    if pl.cdiv(B, tb) < 2 and B > 8:
        tb = _round_up(pl.cdiv(_round_up(B, 8), 2), 8)
    grid = (pl.cdiv(B, tb),)

    out = pl.pallas_call(
        mlp_kernel,
        out_shape=jax.ShapeDtypeStruct((B, OUT_PADDED), jnp.float32),
        grid=grid,
        in_specs=[
            pl.BlockSpec((tb, IN_FEATURES), lambda i: (i, 0)),       # x tile (f32)
            pl.BlockSpec((IN_FEATURES, HIDDEN), lambda i: (0, 0)),   # w1 resident
            pl.BlockSpec((1, HIDDEN), lambda i: (0, 0)),             # b1 resident
            pl.BlockSpec((HIDDEN, OUT_PADDED), lambda i: (0, 0)),    # w2 resident
            pl.BlockSpec((1, OUT_PADDED), lambda i: (0, 0)),         # b2 resident
        ],
        out_specs=pl.BlockSpec((tb, OUT_PADDED), lambda i: (i, 0)),
        compiler_params=pltpu.CompilerParams(
            dimension_semantics=("parallel",),
            # Covers 2x f32 x-tile + 2x out-tile + double-buffered weights for
            # tb up to ~1024 on every generation (v5e 16 MiB scoped default,
            # v7x 64 MiB physical VMEM).
            vmem_limit_bytes=32 * 1024 * 1024,
        ),
    )(x2d, w1_bf, b1_r, w2_p, b2_p)

    # Strip the lane padding of the output slab; rows are already exact.
    return out[:, :OUT_FEATURES]


def init_params(key):
    """Deterministic parameter init (PyTorch-style uniform(-1/sqrt(fan_in), +))."""
    k1, k2, k3, k4 = jax.random.split(key, 4)
    in1, out1 = IN_FEATURES, HIDDEN
    in2, out2 = HIDDEN, OUT_FEATURES
    lim1 = 1.0 / jnp.sqrt(in1)
    lim2 = 1.0 / jnp.sqrt(in2)
    # Stored as (in_features, out_features) — transpose of PyTorch's (out, in).
    w1 = jax.random.uniform(k1, (in1, out1), jnp.float32, -lim1, lim1)
    b1 = jax.random.uniform(k2, (out1,), jnp.float32, -lim1, lim1)
    w2 = jax.random.uniform(k3, (in2, out2), jnp.float32, -lim2, lim2)
    b2 = jax.random.uniform(k4, (out2,), jnp.float32, -lim2, lim2)
    return w1, b1, w2, b2


if __name__ == "__main__":
    key = jax.random.PRNGKey(0)
    kx, kp = jax.random.split(key)

    # Small MNIST-like batch: (B, C, H, W) = (2, 1, 28, 28)
    B = 2
    x = jax.random.normal(kx, (B, 1, 28, 28), jnp.float32)
    w1, b1, w2, b2 = init_params(kp)

    # One-time weight preprocessing, then the jitted Pallas forward.
    w1_bf, b1_r, w2_p, b2_p = prepare_params(w1, b1, w2, b2)
    y = net_forward(x, w1_bf, b1_r, w2_p, b2_p)
    y = jax.block_until_ready(y)

    # Reference check in plain JAX (f32 math); loose tolerance for bf16 operands.
    ref = jnp.maximum(x.reshape(B, -1) @ w1 + b1, 0.0) @ w2 + b2
    assert y.shape == (B, 10)
    assert jnp.allclose(y, ref, atol=2e-2, rtol=2e-2), (
        f"max abs err = {jnp.max(jnp.abs(y - ref))}")

    print("KERNEL_OK")
</pallas_src>

<mosaic_0001>
module attributes {stable_mosaic.version = 11 : i64} {
  func.func @mlp_kernel(%arg0: i32, %arg1: memref<8x784xf32, #tpu.memory_space<vmem>>, %arg2: memref<784x128xbf16, #tpu.memory_space<vmem>>, %arg3: memref<1x128xf32, #tpu.memory_space<vmem>>, %arg4: memref<128x128xbf16, #tpu.memory_space<vmem>>, %arg5: memref<1x128xf32, #tpu.memory_space<vmem>>, %arg6: memref<8x128xf32, #tpu.memory_space<vmem>>) attributes {dimension_semantics = [#tpu.dimension_semantics<parallel>], iteration_bounds = array<i64: 1>, scalar_prefetch = 0 : i64, scratch_operands = 0 : i64, tpu.core_type = #tpu.core_type<tc>, window_params = [{transform_indices = @transform_0, window_bounds = array<i64: 8, 784>}, {pipeline_mode = #tpu.pipeline_mode<synchronous>, transform_indices = @transform_1, window_bounds = array<i64: 784, 128>}, {pipeline_mode = #tpu.pipeline_mode<synchronous>, transform_indices = @transform_2, window_bounds = array<i64: 1, 128>}, {pipeline_mode = #tpu.pipeline_mode<synchronous>, transform_indices = @transform_3, window_bounds = array<i64: 128, 128>}, {pipeline_mode = #tpu.pipeline_mode<synchronous>, transform_indices = @transform_4, window_bounds = array<i64: 1, 128>}, {transform_indices = @transform_5, window_bounds = array<i64: 8, 128>}]} {
    %c0 = arith.constant 0 : index
    %c0_0 = arith.constant 0 : index
    %0 = vector.load %arg1[%c0, %c0_0] : memref<8x784xf32, #tpu.memory_space<vmem>>, vector<8x784xf32>
    %1 = arith.truncf %0 : vector<8x784xf32> to vector<8x784xbf16>
    %c0_1 = arith.constant 0 : index
    %c0_2 = arith.constant 0 : index
    %2 = vector.load %arg2[%c0_1, %c0_2] : memref<784x128xbf16, #tpu.memory_space<vmem>>, vector<784x128xbf16>
    %cst = arith.constant dense<0.000000e+00> : vector<8x128xf32>
    %3 = tpu.matmul %1, %2, %cst {dimension_numbers = #tpu.dot_dimension_numbers<[1], [0], [0], [1], [0, 0, 1, 1], [], []>} : vector<8x784xbf16>, vector<784x128xbf16>, vector<8x128xf32> -> vector<8x128xf32>
    %c0_3 = arith.constant 0 : index
    %c0_4 = arith.constant 0 : index
    %4 = vector.load %arg3[%c0_3, %c0_4] : memref<1x128xf32, #tpu.memory_space<vmem>>, vector<1x128xf32>
    %5 = vector.broadcast %4 : vector<1x128xf32> to vector<8x128xf32>
    %6 = arith.addf %3, %5 : vector<8x128xf32>
    %cst_5 = arith.constant 0.000000e+00 : f32
    %7 = vector.broadcast %cst_5 : f32 to vector<8x128xf32>
    %8 = arith.maximumf %6, %7 : vector<8x128xf32>
    %9 = arith.truncf %8 : vector<8x128xf32> to vector<8x128xbf16>
    %c0_6 = arith.constant 0 : index
    %c0_7 = arith.constant 0 : index
    %10 = vector.load %arg4[%c0_6, %c0_7] : memref<128x128xbf16, #tpu.memory_space<vmem>>, vector<128x128xbf16>
    %cst_8 = arith.constant dense<0.000000e+00> : vector<8x128xf32>
    %11 = tpu.matmul %9, %10, %cst_8 {dimension_numbers = #tpu.dot_dimension_numbers<[1], [0], [0], [1], [0, 0, 1, 1], [], []>} : vector<8x128xbf16>, vector<128x128xbf16>, vector<8x128xf32> -> vector<8x128xf32>
    %c0_9 = arith.constant 0 : index
    %c0_10 = arith.constant 0 : index
    %12 = vector.load %arg5[%c0_9, %c0_10] : memref<1x128xf32, #tpu.memory_space<vmem>>, vector<1x128xf32>
    %13 = vector.broadcast %12 : vector<1x128xf32> to vector<8x128xf32>
    %14 = arith.addf %11, %13 : vector<8x128xf32>
    %c0_11 = arith.constant 0 : index
    %c0_12 = arith.constant 0 : index
    %15 = vector.load %arg6[%c0_11, %c0_12] : memref<8x128xf32, #tpu.memory_space<vmem>>, vector<8x128xf32>
    tpu.vector_store %arg6[%c0_11, %c0_12], %14 {strides = array<i32>} : memref<8x128xf32, #tpu.memory_space<vmem>>, vector<8x128xf32>,
    return
  }
  func.func @transform_0(%arg0: i32) -> (i32, i32) {
    %c0_i32 = arith.constant 0 : i32
    %c0_i32_0 = arith.constant 0 : i32
    return %arg0, %c0_i32 : i32, i32
  }
  func.func @transform_1(%arg0: i32) -> (i32, i32) {
    %c0_i32 = arith.constant 0 : i32
    %c0_i32_0 = arith.constant 0 : i32
    %c0_i32_1 = arith.constant 0 : i32
    return %c0_i32, %c0_i32_0 : i32, i32
  }
  func.func @transform_2(%arg0: i32) -> (i32, i32) {
    %c0_i32 = arith.constant 0 : i32
    %c0_i32_0 = arith.constant 0 : i32
    %c0_i32_1 = arith.constant 0 : i32
    return %c0_i32, %c0_i32_0 : i32, i32
  }
  func.func @transform_3(%arg0: i32) -> (i32, i32) {
    %c0_i32 = arith.constant 0 : i32
    %c0_i32_0 = arith.constant 0 : i32
    %c0_i32_1 = arith.constant 0 : i32
    return %c0_i32, %c0_i32_0 : i32, i32
  }
  func.func @transform_4(%arg0: i32) -> (i32, i32) {
    %c0_i32 = arith.constant 0 : i32
    %c0_i32_0 = arith.constant 0 : i32
    %c0_i32_1 = arith.constant 0 : i32
    return %c0_i32, %c0_i32_0 : i32, i32
  }
  func.func @transform_5(%arg0: i32) -> (i32, i32) {
    %c0_i32 = arith.constant 0 : i32
    %c0_i32_0 = arith.constant 0 : i32
    return %arg0, %c0_i32 : i32, i32
  }
}

</mosaic_0001>

<bundles_post_ra>
// kernel: net_forward.1
= control target key start
LH: loop header
LB: loop body
LE: loop exit
PB: predicated region body
PF: predicated region fallthrough
CT: control target
= control target key end

     0   :  { %10 = vsyncpa [#allocation3], 0  ;;  %s1126_s0 = inlined_call_operand.vmem [shape: f32[2,784], index: 0, kind: input, shape index: {}]   ;;  %s1127_s1 = inlined_call_operand.hbm [shape: bf16[784,128], index: 1, kind: input, shape index: {}]   ;;  %s1128_s2 = inlined_call_operand.vmem [shape: f32[1,128], index: 2, kind: input, shape index: {}]   ;;  %s1129_s3 = inlined_call_operand.vmem [shape: bf16[128,128], index: 3, kind: input, shape index: {}]   ;;  %s1130_s4 = inlined_call_operand.vmem [shape: f32[1,128], index: 4, kind: input, shape index: {}]   ;;  %s1131_s5 = inlined_call_operand.hbm [shape: f32[2,128], index: 5, kind: output, shape index: {}]  }
   0x1   :  { %11 = vsyncpa [#allocation4], 0  ;;  %s18_s20 = sshll.u32 %s1127_s1, 4  ;;  %s1030_s21 = smov [#allocation2]   ;;  %s19_s20 = int_to_ptr.hbm [resolvable:$true] %s18_s20 }
   0x2   :  { %s20_s22 = sshll.u32 %s1030_s21, 4  ;;  %s1031_s23 = smov 64   ;;  %s21_s22 = int_to_ptr.vmem [resolvable:$true] %s20_s22 }
   0x3   :  { %s1032_s24 = smov 4  }
   0x4   :  { %26 = dma.hbm_to_vmem [thread:$0]  %s19_s20, 6272, %s21_s22, [#allocation3], %s1031_s23, %s1031_s23, %s1032_s24  }
   0x5   :  { %1026 = dma.done.wait [#allocation3], 6272  }
   0x6   :  { %1027 = vsyncadd [#allocation3], 4294961024  ;;  %v920_v0 = vld [vmem:[#allocation2 + $0x38] sm:$0xff]  ;;  %v919_v3 = vld [vmem:[#allocation2 + $0x30] sm:$0xff]  ;;  %vm486_vm0 = vcmask 130048  }
   0x7   :  { %v928_v1 = vld [vmem:[#allocation2 + $0x78] sm:$0xff]  ;;  %490 = vmatpush.bf16.msra.mxu0 %v920_v0  ;;  %v927_v4 = vld [vmem:[#allocation2 + $0x70] sm:$0xff]  ;;  %v918_v8 = vld [vmem:[#allocation2 + $0x28] sm:$0xff] }
   0x8   :  { %v936_v2 = vld [vmem:[#allocation2 + $0xb8] sm:$0xff]  ;;  %503 = vmatpush.bf16.msra.mxu1 %v928_v1  ;;  %v935_v5 = vld [vmem:[#allocation2 + $0xb0] sm:$0xff]  ;;  %v926_v9 = vld [vmem:[#allocation2 + $0x68] sm:$0xff] }
   0x9   :  { %516 = vmatpush.bf16.msra.mxu2 %v936_v2  ;;  %v944_v6 = vld [vmem:[#allocation2 + $0xf8] sm:$0xff]  ;;  %v943_v7 = vld [vmem:[#allocation2 + $0xf0] sm:$0xff]  ;;  %v934_v10 = vld [vmem:[#allocation2 + $0xa8] sm:$0xff] }
   0xa   :  { %529 = vmatpush.bf16.msra.mxu3 %v944_v6  ;;  %v942_v11 = vld [vmem:[#allocation2 + $0xe8] sm:$0xff]  ;;  %v917_v12 = vld [vmem:[#allocation2 + $0x20] sm:$0xff]  ;;  %v38_v15 = vld [vmem:[%s1126_s0] sm:$0xff] }
   0xb   :  { %491 = vmatpush.bf16.msra.mxu0 %v919_v3  ;;  %v925_v13 = vld [vmem:[#allocation2 + $0x60] sm:$0xff]  ;;  %v42_v17 = vld [vmem:[%s1126_s0 + $0x1c] sm:$0xff]  ;;  %54 = vst [vmem:[#allocation1] ss:$4 sm:$0xff] %v38_v15  ;;  %v41_v25 = vld [vmem:[%s1126_s0 + $0x16] sm:$0x3f] }
   0xc   :  { %504 = vmatpush.bf16.msra.mxu1 %v927_v4  ;;  %v933_v14 = vld [vmem:[#allocation2 + $0xa0] sm:$0xff]  ;;  %v916_v20 = vld [vmem:[#allocation2 + $0x18] sm:$0xff]  ;;  %58 = vst [vmem:[#allocation1 + $0x2] ss:$4 sm:$0xff] %v42_v17  ;;  %v915_v23 = vld [vmem:[#allocation2 + $0x10] sm:$0xff] }
   0xd   :  { %517 = vmatpush.bf16.msra.mxu2 %v935_v5  ;;  %v40_v16 = vld [vmem:[%s1126_s0 + $0xe] sm:$0xff]  ;;  %v924_v21 = vld [vmem:[#allocation2 + $0x58] sm:$0xff]  ;;  %v39_v24 = vld [vmem:[%s1126_s0 + $0x8] sm:$0x3f]  ;;  %64 = vst [vmem:[#allocation1 + $0x21] ss:$4 sm:$0xff] %v41_v25 }
   0xe   :  { %530 = vmatpush.bf16.msra.mxu3 %v943_v7  ;;  %v44_v18 = vld [vmem:[%s1126_s0 + $0x2a] sm:$0xff]  ;;  %56 = vst [vmem:[#allocation1 + $0x1] ss:$4 sm:$0xff] %v40_v16  ;;  %v932_v22 = vld [vmem:[#allocation2 + $0x98] sm:$0xff]  ;;  %v923_v27 = vld [vmem:[#allocation2 + $0x50] sm:$0xff] }
   0xf   :  { %492 = vmatpush.bf16.msra.mxu0 %v918_v8  ;;  %v941_v19 = vld [vmem:[#allocation2 + $0xe0] sm:$0xff]  ;;  %60 = vst [vmem:[#allocation1 + $0x3] ss:$4 sm:$0xff] %v44_v18  ;;  %v940_v28 = vld [vmem:[#allocation2 + $0xd8] sm:$0xff]  ;;  %v45_v29 = vld [vmem:[%s1126_s0 + $0x32] sm:$0x3f] }
  0x10   :  { %505 = vmatpush.bf16.msra.mxu1 %v926_v9  ;;  %v43_v26 = vld [vmem:[%s1126_s0 + $0x24] sm:$0x3f]  ;;  %62 = vst [vmem:[#allocation1 + $0x20] ss:$4 sm:$0xff] %v39_v24  ;;  %v931_v30 = vld [vmem:[#allocation2 + $0x90] sm:$0xff]  ;;  %v914_v32 = vld [vmem:[#allocation2 + $0x8] sm:$0xff] }
  0x11   :  { %518 = vmatpush.bf16.msra.mxu2 %v934_v10  ;;  %66 = vst [vmem:[#allocation1 + $0x22] ss:$4 sm:$0xff] %v43_v26  ;;  %v939_v31 = vld [vmem:[#allocation2 + $0xd0] sm:$0xff]  ;;  %v922_v33 = vld [vmem:[#allocation2 + $0x48] sm:$0xff]  ;;  %v913_v35 = vld [vmem:[#allocation2] sm:$0xff] }
  0x12   :  { %531 = vmatpush.bf16.msra.mxu3 %v942_v11  ;;  %68 = vst [vmem:[#allocation1 + $0x23] ss:$4 sm:$0xff] %v45_v29  ;;  %v930_v34 = vld [vmem:[#allocation2 + $0x88] sm:$0xff]  ;;  %v921_v36 = vld [vmem:[#allocation2 + $0x40] sm:$0xff]  ;;  %v952_v40 = vld [vmem:[#allocation2 + $0x138] sm:$0xff] }
  0x13   :  { %493 = vmatpush.bf16.msra.mxu0 %v917_v12  ;;  %v938_v37 = vld [vmem:[#allocation2 + $0xc8] sm:$0xff]  ;;  %v960_v41 = vld [vmem:[#allocation2 + $0x178] sm:$0xff]  ;;  %v929_v42 = vld [vmem:[#allocation2 + $0x80] sm:$0xff] }
  0x14   :  { %506 = vmatpush.bf16.msra.mxu1 %v925_v13  ;;  %v937_v46 = vld [vmem:[#allocation2 + $0xc0] sm:$0xff]  ;;  %v951_v49 = vld [vmem:[#allocation2 + $0x130] sm:$0xff]  ;;  %v950_v53 = vld [vmem:[#allocation2 + $0x128] sm:$0xff] }
  0x15   :  { %519 = vmatpush.bf16.msra.mxu2 %v933_v14  ;;  %v961_v47 = vld [vmem:[#allocation2 + $0x180] sm:$0xff]  ;;  %v959_v50 = vld [vmem:[#allocation2 + $0x170] sm:$0xff]  ;;  %v958_v54 = vld [vmem:[#allocation2 + $0x168] sm:$0xff] }
  0x16   :  { %532 = vmatpush.bf16.msra.mxu3 %v941_v19  ;;  %v69_v38 = vld.sshfl [vmem:[#allocation1] sm:$0xff pattern:$0x73625140]  ;;  %v70_v39 = vld.sshfl [vmem:[#allocation1 + $0x8] sm:$0xff pattern:$0x73625140] }
  0x17   :  { %494 = vmatpush.bf16.msra.mxu0 %v916_v20  ;;  %v71_v43 = vld.sshfl [vmem:[#allocation1 + $0x10] sm:$0xff pattern:$0x73625140]  ;;  %v83_v44 = vpack.c.bf16 %v69_v38, %v69_v38  ;;  %v84_v45 = vpack.c.bf16 %v70_v39, %v70_v39  ;;  %v72_v48 = vld.sshfl [vmem:[#allocation1 + $0x18] sm:$0xff pattern:$0x73625140] }
  0x18   :  { %507 = vmatpush.bf16.msra.mxu1 %v924_v21  ;;  %v85_v51 = vpack.c.bf16 %v71_v43, %v71_v43  ;;  %v86_v52 = vpack.c.bf16 %v72_v48, %v72_v48  ;;  %v949_v55 = vld [vmem:[#allocation2 + $0x120] sm:$0xff]  ;;  %v948_v57 = vld [vmem:[#allocation2 + $0x118] sm:$0xff]  ;;  %v947_v60 = vld [vmem:[#allocation2 + $0x110] sm:$0xff] }
  0x19   :  { %520 = vmatpush.bf16.msra.mxu2 %v932_v22  ;;  %v957_v56 = vld [vmem:[#allocation2 + $0x160] sm:$0xff]  ;;  %v956_v58 = vld [vmem:[#allocation2 + $0x158] sm:$0xff]  ;;  %v75_v59 = vld.sshfl [vmem:[#allocation1 + $0x30] sm:$0xff pattern:$0x73625140] }
  0x1a   :  { %533 = vmatpush.bf16.msra.mxu3 %v940_v28  ;;  %v955_v61 = vld [vmem:[#allocation2 + $0x150] sm:$0xff]  ;;  %v89_v62 = vpack.c.bf16 %v75_v59, %v75_v59  ;;  %v946_v63 = vld [vmem:[#allocation2 + $0x108] sm:$0xff]  ;;  %v945_v1 = vld [vmem:[#allocation2 + $0x100] sm:$0xff] }
  0x1b   :  { %495 = vmatpush.bf16.msra.mxu0 %v915_v23  ;;  %v954_v0 = vld [vmem:[#allocation2 + $0x148] sm:$0xff]  ;;  %v953_v2 = vld [vmem:[#allocation2 + $0x140] sm:$0xff]  ;;  %v73_v3 = vld.sshfl [vmem:[#allocation1 + $0x20] sm:$0xff pattern:$0x73625140] }
  0x1c   :  { %508 = vmatpush.bf16.msra.mxu1 %v923_v27  ;;  %v74_v4 = vld.sshfl [vmem:[#allocation1 + $0x28] sm:$0xff pattern:$0x73625140]  ;;  %v87_v5 = vpack.c.bf16 %v73_v3, %v73_v3  ;;  %v969_v7 = vld [vmem:[%s1129_s3 + $0x38] sm:$0xff]  ;;  %v968_v8 = vld [vmem:[%s1129_s3 + $0x30] sm:$0xff] }
  0x1d   :  { %521 = vmatpush.bf16.msra.mxu2 %v931_v30  ;;  %v88_v6 = vpack.c.bf16 %v74_v4, %v74_v4  ;;  %v967_v9 = vld [vmem:[%s1129_s3 + $0x28] sm:$0xff]  ;;  %v966_v10 = vld [vmem:[%s1129_s3 + $0x20] sm:$0xff]  ;;  %v965_v11 = vld [vmem:[%s1129_s3 + $0x18] sm:$0xff] }
  0x1e   :  { %534 = vmatpush.bf16.msra.mxu3 %v939_v31  ;;  %v964_v12 = vld [vmem:[%s1129_s3 + $0x10] sm:$0xff]  ;;  %v963_v13 = vld [vmem:[%s1129_s3 + $0x8] sm:$0xff]  ;;  %v962_v16 = vld [vmem:[%s1129_s3] sm:$0xff] }
  0x1f   :  { %496 = vmatpush.bf16.msra.mxu0 %v914_v32  ;;  %v976_v21 = vld [vmem:[%s1128_s2] ss:$0 sm:$0xff] }
  0x20   :  { %509 = vmatpush.bf16.msra.mxu1 %v922_v33  ;;  %v977_v39 = vld [vmem:[%s1130_s4] ss:$0 sm:$0xff] }
  0x21   :  { %522 = vmatpush.bf16.msra.mxu2 %v930_v34 }
  0x22   :  { %535 = vmatpush.bf16.msra.mxu3 %v938_v37 }
  0x23   :  { %497 = vmatpush.bf16.msra.mxu0 %v913_v35 }
  0x24   :  { %510 = vmatpush.bf16.msra.mxu1 %v921_v36 }
  0x25   :  { %523 = vmatpush.bf16.msra.mxu2 %v929_v42 }
  0x26   :  { %498 = vmatmul.bf16.vlgmr.msra.gmra.mxu0 %v83_v44  ;;  %536 = vmatpush.bf16.msra.mxu3 %v937_v46 }
  0x27   :  { %542 = vmatpush.bf16.msrb.mxu0 %v952_v40  ;;  %511 = vmatmul.bf16.vlgmr.msra.gmra.mxu1 %v84_v45 }
  0x28   :  { %555 = vmatpush.bf16.msrb.mxu1 %v960_v41  ;;  %524 = vmatmul.bf16.vlgmr.msra.gmra.mxu2 %v85_v51 }
  0x29   :  { %575 = vmatpush.bf16.msrb.mxu2 %v961_v47  ;;  %537 = vmatmul.bf16.vlgmr.msra.gmra.mxu3 %v86_v52 }
  0x2a   :  { %651 = vmatpush.bf16.msrb.mxu3 %v969_v7 }
  0x2b   :  { %543 = vmatpush.bf16.msrb.mxu0 %v951_v49 }
  0x2c   :  { %556 = vmatpush.bf16.msrb.mxu1 %v959_v50 }
  0x2e   :  { %652 = vmatpush.bf16.msrb.mxu3 %v968_v8 }
  0x2f   :  { %544 = vmatpush.bf16.msrb.mxu0 %v950_v53 }
  0x30   :  { %557 = vmatpush.bf16.msrb.mxu1 %v958_v54 }
  0x32   :  { %653 = vmatpush.bf16.msrb.mxu3 %v967_v9 }
  0x33   :  { %545 = vmatpush.bf16.msrb.mxu0 %v949_v55 }
  0x34   :  { %558 = vmatpush.bf16.msrb.mxu1 %v957_v56 }
  0x36   :  { %654 = vmatpush.bf16.msrb.mxu3 %v966_v10 }
  0x37   :  { %546 = vmatpush.bf16.msrb.mxu0 %v948_v57 }
  0x38   :  { %559 = vmatpush.bf16.msrb.mxu1 %v956_v58  ;;  %880 = vmatmul.msk.bf16.vlgmr.msrb.gmra.mxu2 %vm486_vm0, %v89_v62 }
  0x3a   :  { %655 = vmatpush.bf16.msrb.mxu3 %v965_v11 }
  0x3b   :  { %547 = vmatpush.bf16.msrb.mxu0 %v947_v60 }
  0x3c   :  { %560 = vmatpush.bf16.msrb.mxu1 %v955_v61 }
  0x3e   :  { %656 = vmatpush.bf16.msrb.mxu3 %v964_v12 }
  0x3f   :  { %548 = vmatpush.bf16.msrb.mxu0 %v946_v63 }
  0x40   :  { %561 = vmatpush.bf16.msrb.mxu1 %v954_v0 }
  0x42   :  { %657 = vmatpush.bf16.msrb.mxu3 %v963_v13 }
  0x43   :  { %549 = vmatpush.bf16.msrb.mxu0 %v945_v1 }
  0x44   :  { %562 = vmatpush.bf16.msrb.mxu1 %v953_v2 }
  0x46   :  { %550 = vmatmul.bf16.vlgmr.msrb.gmra.mxu0 %v87_v5  ;;  %658 = vmatpush.bf16.msrb.mxu3 %v962_v16 }
  0x47   :  { %563 = vmatmul.bf16.vlgmr.msrb.gmra.mxu1 %v88_v6 }
  0xa3   :  { %v499_v14 = vpop.f32.mrf.mxu0 }
  0xa4   :  { %v512_v15 = vpop.f32.mrf.mxu1  ;;  %v500_v22 = vadd.f32 %v976_v21, %v499_v14 }
  0xa6   :  { %v513_v25 = vadd.f32 %v512_v15, %v500_v22 }
  0xab   :  { %v501_v17 = vpop.f32.mrf.mxu0  ;;  %v525_v19 = vpop.f32.mrf.mxu2 }
  0xac   :  { %v514_v18 = vpop.f32.mrf.mxu1  ;;  %v538_v20 = vpop.f32.mrf.mxu3  ;;  %v526_v26 = vadd.f32 %v525_v19, %v513_v25 }
  0xae   :  { %v539_v28 = vadd.f32 %v538_v20, %v526_v26 }
  0xb3   :  { %v527_v23 = vpop.f32.mrf.mxu2 }
  0xb4   :  { %v540_v24 = vpop.f32.mrf.mxu3 }
  0xbb   :  { %v577_v27 = vpop.f32.mrf.mxu2 }
  0xc3   :  { %v551_v29 = vpop.f32.mrf.mxu0  ;;  %v579_v33 = vpop.f32.mrf.mxu2 }
  0xc4   :  { %v564_v30 = vpop.f32.mrf.mxu1  ;;  %v552_v31 = vadd.f32 %v551_v29, %v539_v28 }
  0xc6   :  { %v565_v32 = vadd.f32 %v564_v30, %v552_v31 }
  0xc8   :  { %v578_v34 = vadd.f32 %v577_v27, %v565_v32 }
  0xca   :  { %v581_v35 = vmax.f32 %v578_v34, 0.0 }
  0xcb   :  { %v553_v36 = vpop.f32.mrf.mxu0 }
  0xcc   :  { %v566_v37 = vpop.f32.mrf.mxu1  ;;  %v582_v38 = vpack.c.bf16 %v581_v35, %v581_v35 }
  0xce   :  { %659 = vmatmul.bf16.vlgmr.msrb.gmra.mxu3 %v582_v38 }
 0x151   :  { %v660_v40 = vpop.f32.mrf.mxu3 }
 0x152   :  { %v661_v41 = vadd.f32 %v977_v39, %v660_v40 }
 0x154   :  { %664 = vst [vmem:[#allocation5] sm:$0xff] %v661_v41 }
 0x159   :  { %v662_v42 = vpop.f32.mrf.mxu3 }
 0x15a   :  { %668 = vsyncadd [#allocation4], 96  ;;  %s671_s8 = sshll.u32 %s1131_s5, 4  ;;  %s1033_s9 = smov [#allocation5]   ;;  %s672_s8 = int_to_ptr.hbm [resolvable:$true] %s671_s8 }
 0x15b   :  { %s669_s10 = sshll.u32 %s1033_s9, 4  ;;  %s1034_s11 = smov 32   ;;  %s670_s10 = int_to_ptr.vmem [resolvable:$true] %s669_s10 }
 0x15c   :  { %s1035_s12 = smov 2  }
 0x15d   :  { %677 = dma.vmem_to_hbm [thread:$0]  %s670_s10, 32, %s672_s8, [#allocation4], %s1034_s11, %s1034_s11, %s1035_s12  }
 0x15e   :  { %1028 = dma.done.wait [#allocation4], 128  }
 0x15f   :  { %1029 = vsyncadd [#allocation4], 4294967168 }
 0x160   :  { %682 = vsyncpa [#allocation3], 1 }
 0x161   :  { %683 = vsyncpa [#allocation4], 1 }

</bundles_post_ra>
